<compile_context>
chip_gen: v7x
topology: tpu7x:2x2x1
jax: 0.10.0
libtpu: 0.0.40
codegen_flags: <defaults>
</compile_context>

<pallas_src>
import jax
import jax.numpy as jnp
from jax.experimental import pallas as pl
from jax.experimental.pallas import tpu as pltpu


def _round_up(x, m):
    return ((x + m - 1) // m) * m


def mlp_kernel(x_ref, w1_ref, b1_ref, w2_ref, b2_ref, w3_ref, b3_ref, o_ref):
    # x_ref:  (TB, 784)  bf16      w1: (784, Dp) bf16    b1: (1, Dp) f32
    # w2:     (Dp, Dp)   bf16      b2: (1, Dp)   f32
    # w3:     (Dp, Cp)   bf16      b3: (1, Cp)   f32     o_ref: (TB, Cp) f32
    h = jnp.dot(x_ref[...], w1_ref[...], preferred_element_type=jnp.float32)
    h = jnp.maximum(h + b1_ref[...], 0.0)

    h = jnp.dot(h.astype(jnp.bfloat16), w2_ref[...],
                preferred_element_type=jnp.float32)
    h = jnp.maximum(h + b2_ref[...], 0.0)

    out = jnp.dot(h.astype(jnp.bfloat16), w3_ref[...],
                  preferred_element_type=jnp.float32)
    o_ref[...] = (out + b3_ref[...]).astype(o_ref.dtype)


def mnist_mlp_forward(x_nchw, params, *, tile_b=1024):
    """x_nchw: (B, 1, 28, 28) float32. Returns logits (B, n_classes) float32."""
    w1, b1, w2, b2, w3, b3 = params
    B = x_nchw.shape[0]
    in_features = w1.shape[0]          # 784
    D = w1.shape[1]                    # 200
    n_classes = w3.shape[1]            # 10

    # Lane-dense padded widths (multiples of 128).
    D_pad = _round_up(D, 128)          # 256
    C_pad = _round_up(n_classes, 128)  # 128

    # flatten(start_dim=1), cast matmul operands to bf16 (halves HBM traffic,
    # native MXU path); biases stay f32 for the f32 epilogue.
    x = x_nchw.reshape(B, -1).astype(jnp.bfloat16)

    w1p = jnp.pad(w1, ((0, 0), (0, D_pad - D))).astype(jnp.bfloat16)
    b1p = jnp.pad(b1, ((0, 0), (0, D_pad - D))).astype(jnp.float32)
    w2p = jnp.pad(w2, ((0, D_pad - D), (0, D_pad - D))).astype(jnp.bfloat16)
    b2p = jnp.pad(b2, ((0, 0), (0, D_pad - D))).astype(jnp.float32)
    w3p = jnp.pad(w3, ((0, D_pad - D), (0, C_pad - n_classes))).astype(jnp.bfloat16)
    b3p = jnp.pad(b3, ((0, 0), (0, C_pad - n_classes))).astype(jnp.float32)

    # Batch tiling: TILE_B <= 1024 (safe on v7x's 64 MiB VMEM, still fat enough
    # to amortize the ~0.35 us/step overhead on v5e/v6e). Pad B so every grid
    # step sees a full (TILE_B, 784) tile.
    tb = min(tile_b, _round_up(B, 8))
    B_pad = _round_up(B, tb)
    if B_pad != B:
        x = jnp.pad(x, ((0, B_pad - B), (0, 0)))

    grid = (B_pad // tb,)
    out = pl.pallas_call(
        mlp_kernel,
        out_shape=jax.ShapeDtypeStruct((B_pad, C_pad), jnp.float32),
        grid=grid,
        in_specs=[
            pl.BlockSpec((tb, in_features), lambda i: (i, 0)),     # x: batch-tiled
            pl.BlockSpec((in_features, D_pad), lambda i: (0, 0)),  # w1: resident
            pl.BlockSpec((1, D_pad), lambda i: (0, 0)),            # b1
            pl.BlockSpec((D_pad, D_pad), lambda i: (0, 0)),        # w2
            pl.BlockSpec((1, D_pad), lambda i: (0, 0)),            # b2
            pl.BlockSpec((D_pad, C_pad), lambda i: (0, 0)),        # w3
            pl.BlockSpec((1, C_pad), lambda i: (0, 0)),            # b3
        ],
        out_specs=pl.BlockSpec((tb, C_pad), lambda i: (i, 0)),
        compiler_params=pltpu.CompilerParams(
            dimension_semantics=("parallel",)),
    )(x, w1p, b1p, w2p, b2p, w3p, b3p)

    return out[:B, :n_classes]


def init_params(key, n_classes=10, dim=200, in_features=28 * 28):
    """Deterministic init mirroring nn.Linear's uniform(-1/sqrt(fan_in), 1/sqrt(fan_in))."""
    ks = jax.random.split(key, 6)

    def linear(kw, kb, fan_in, fan_out):
        bound = 1.0 / jnp.sqrt(fan_in)
        w = jax.random.uniform(kw, (fan_in, fan_out), jnp.float32, -bound, bound)
        b = jax.random.uniform(kb, (1, fan_out), jnp.float32, -bound, bound)
        return w, b

    w1, b1 = linear(ks[0], ks[1], in_features, dim)
    w2, b2 = linear(ks[2], ks[3], dim, dim)
    w3, b3 = linear(ks[4], ks[5], dim, n_classes)
    return (w1, b1, w2, b2, w3, b3)


if __name__ == "__main__":
    key = jax.random.PRNGKey(0)
    k_x, k_p = jax.random.split(key)

    B, n_classes, dim = 4, 10, 200
    x = jax.random.normal(k_x, (B, 1, 28, 28), jnp.float32)  # NCHW like PyTorch
    params = init_params(k_p, n_classes=n_classes, dim=dim)

    logits = mnist_mlp_forward(x, params)
    jax.block_until_ready(logits)
    assert logits.shape == (B, n_classes)

    # Reference with the same bf16-operand / f32-accumulation recipe.
    w1, b1, w2, b2, w3, b3 = params
    xf = x.reshape(B, -1).astype(jnp.bfloat16)
    h = jnp.maximum(jnp.dot(xf, w1.astype(jnp.bfloat16),
                            preferred_element_type=jnp.float32) + b1, 0.0)
    h = jnp.maximum(jnp.dot(h.astype(jnp.bfloat16), w2.astype(jnp.bfloat16),
                            preferred_element_type=jnp.float32) + b2, 0.0)
    ref_bf16 = jnp.dot(h.astype(jnp.bfloat16), w3.astype(jnp.bfloat16),
                       preferred_element_type=jnp.float32) + b3
    assert jnp.allclose(logits, ref_bf16, atol=1e-2, rtol=1e-2)

    # Looser sanity check against the pure-f32 PyTorch-equivalent math.
    xf32 = x.reshape(B, -1)
    r = jnp.maximum(xf32 @ w1 + b1, 0.0)
    r = jnp.maximum(r @ w2 + b2, 0.0)
    ref_f32 = r @ w3 + b3
    assert jnp.allclose(logits, ref_f32, atol=5e-2, rtol=5e-2)

    print("KERNEL_OK")
</pallas_src>

<mosaic_0001>
module attributes {stable_mosaic.version = 11 : i64} {
  func.func @mlp_kernel(%arg0: i32, %arg1: memref<8x784xbf16, #tpu.memory_space<vmem>>, %arg2: memref<784x256xbf16, #tpu.memory_space<vmem>>, %arg3: memref<1x256xf32, #tpu.memory_space<vmem>>, %arg4: memref<256x256xbf16, #tpu.memory_space<vmem>>, %arg5: memref<1x256xf32, #tpu.memory_space<vmem>>, %arg6: memref<256x128xbf16, #tpu.memory_space<vmem>>, %arg7: memref<1x128xf32, #tpu.memory_space<vmem>>, %arg8: memref<8x128xf32, #tpu.memory_space<vmem>>) attributes {dimension_semantics = [#tpu.dimension_semantics<parallel>], iteration_bounds = array<i64: 1>, scalar_prefetch = 0 : i64, scratch_operands = 0 : i64, tpu.core_type = #tpu.core_type<tc>, window_params = [{transform_indices = @transform_0, window_bounds = array<i64: 8, 784>}, {pipeline_mode = #tpu.pipeline_mode<synchronous>, transform_indices = @transform_1, window_bounds = array<i64: 784, 256>}, {pipeline_mode = #tpu.pipeline_mode<synchronous>, transform_indices = @transform_2, window_bounds = array<i64: 1, 256>}, {pipeline_mode = #tpu.pipeline_mode<synchronous>, transform_indices = @transform_3, window_bounds = array<i64: 256, 256>}, {pipeline_mode = #tpu.pipeline_mode<synchronous>, transform_indices = @transform_4, window_bounds = array<i64: 1, 256>}, {pipeline_mode = #tpu.pipeline_mode<synchronous>, transform_indices = @transform_5, window_bounds = array<i64: 256, 128>}, {pipeline_mode = #tpu.pipeline_mode<synchronous>, transform_indices = @transform_6, window_bounds = array<i64: 1, 128>}, {transform_indices = @transform_7, window_bounds = array<i64: 8, 128>}]} {
    %c0 = arith.constant 0 : index
    %c0_0 = arith.constant 0 : index
    %0 = vector.load %arg1[%c0, %c0_0] : memref<8x784xbf16, #tpu.memory_space<vmem>>, vector<8x784xbf16>
    %c0_1 = arith.constant 0 : index
    %c0_2 = arith.constant 0 : index
    %1 = vector.load %arg2[%c0_1, %c0_2] : memref<784x256xbf16, #tpu.memory_space<vmem>>, vector<784x256xbf16>
    %cst = arith.constant dense<0.000000e+00> : vector<8x256xf32>
    %2 = tpu.matmul %0, %1, %cst {dimension_numbers = #tpu.dot_dimension_numbers<[1], [0], [0], [1], [0, 0, 1, 1], [], []>} : vector<8x784xbf16>, vector<784x256xbf16>, vector<8x256xf32> -> vector<8x256xf32>
    %c0_3 = arith.constant 0 : index
    %c0_4 = arith.constant 0 : index
    %3 = vector.load %arg3[%c0_3, %c0_4] : memref<1x256xf32, #tpu.memory_space<vmem>>, vector<1x256xf32>
    %4 = vector.broadcast %3 : vector<1x256xf32> to vector<8x256xf32>
    %5 = arith.addf %2, %4 : vector<8x256xf32>
    %cst_5 = arith.constant 0.000000e+00 : f32
    %6 = vector.broadcast %cst_5 : f32 to vector<8x256xf32>
    %7 = arith.maximumf %5, %6 : vector<8x256xf32>
    %8 = arith.truncf %7 : vector<8x256xf32> to vector<8x256xbf16>
    %c0_6 = arith.constant 0 : index
    %c0_7 = arith.constant 0 : index
    %9 = vector.load %arg4[%c0_6, %c0_7] : memref<256x256xbf16, #tpu.memory_space<vmem>>, vector<256x256xbf16>
    %cst_8 = arith.constant dense<0.000000e+00> : vector<8x256xf32>
    %10 = tpu.matmul %8, %9, %cst_8 {dimension_numbers = #tpu.dot_dimension_numbers<[1], [0], [0], [1], [0, 0, 1, 1], [], []>} : vector<8x256xbf16>, vector<256x256xbf16>, vector<8x256xf32> -> vector<8x256xf32>
    %c0_9 = arith.constant 0 : index
    %c0_10 = arith.constant 0 : index
    %11 = vector.load %arg5[%c0_9, %c0_10] : memref<1x256xf32, #tpu.memory_space<vmem>>, vector<1x256xf32>
    %12 = vector.broadcast %11 : vector<1x256xf32> to vector<8x256xf32>
    %13 = arith.addf %10, %12 : vector<8x256xf32>
    %cst_11 = arith.constant 0.000000e+00 : f32
    %14 = vector.broadcast %cst_11 : f32 to vector<8x256xf32>
    %15 = arith.maximumf %13, %14 : vector<8x256xf32>
    %16 = arith.truncf %15 : vector<8x256xf32> to vector<8x256xbf16>
    %c0_12 = arith.constant 0 : index
    %c0_13 = arith.constant 0 : index
    %17 = vector.load %arg6[%c0_12, %c0_13] : memref<256x128xbf16, #tpu.memory_space<vmem>>, vector<256x128xbf16>
    %cst_14 = arith.constant dense<0.000000e+00> : vector<8x128xf32>
    %18 = tpu.matmul %16, %17, %cst_14 {dimension_numbers = #tpu.dot_dimension_numbers<[1], [0], [0], [1], [0, 0, 1, 1], [], []>} : vector<8x256xbf16>, vector<256x128xbf16>, vector<8x128xf32> -> vector<8x128xf32>
    %c0_15 = arith.constant 0 : index
    %c0_16 = arith.constant 0 : index
    %19 = vector.load %arg7[%c0_15, %c0_16] : memref<1x128xf32, #tpu.memory_space<vmem>>, vector<1x128xf32>
    %20 = vector.broadcast %19 : vector<1x128xf32> to vector<8x128xf32>
    %21 = arith.addf %18, %20 : vector<8x128xf32>
    %c0_17 = arith.constant 0 : index
    %c0_18 = arith.constant 0 : index
    %22 = vector.load %arg8[%c0_17, %c0_18] : memref<8x128xf32, #tpu.memory_space<vmem>>, vector<8x128xf32>
    tpu.vector_store %arg8[%c0_17, %c0_18], %21 {strides = array<i32>} : memref<8x128xf32, #tpu.memory_space<vmem>>, vector<8x128xf32>,
    return
  }
  func.func @transform_0(%arg0: i32) -> (i32, i32) {
    %c0_i32 = arith.constant 0 : i32
    %c0_i32_0 = arith.constant 0 : i32
    return %arg0, %c0_i32 : i32, i32
  }
  func.func @transform_1(%arg0: i32) -> (i32, i32) {
    %c0_i32 = arith.constant 0 : i32
    %c0_i32_0 = arith.constant 0 : i32
    %c0_i32_1 = arith.constant 0 : i32
    return %c0_i32, %c0_i32_0 : i32, i32
  }
  func.func @transform_2(%arg0: i32) -> (i32, i32) {
    %c0_i32 = arith.constant 0 : i32
    %c0_i32_0 = arith.constant 0 : i32
    %c0_i32_1 = arith.constant 0 : i32
    return %c0_i32, %c0_i32_0 : i32, i32
  }
  func.func @transform_3(%arg0: i32) -> (i32, i32) {
    %c0_i32 = arith.constant 0 : i32
    %c0_i32_0 = arith.constant 0 : i32
    %c0_i32_1 = arith.constant 0 : i32
    return %c0_i32, %c0_i32_0 : i32, i32
  }
  func.func @transform_4(%arg0: i32) -> (i32, i32) {
    %c0_i32 = arith.constant 0 : i32
    %c0_i32_0 = arith.constant 0 : i32
    %c0_i32_1 = arith.constant 0 : i32
    return %c0_i32, %c0_i32_0 : i32, i32
  }
  func.func @transform_5(%arg0: i32) -> (i32, i32) {
    %c0_i32 = arith.constant 0 : i32
    %c0_i32_0 = arith.constant 0 : i32
    %c0_i32_1 = arith.constant 0 : i32
    return %c0_i32, %c0_i32_0 : i32, i32
  }
  func.func @transform_6(%arg0: i32) -> (i32, i32) {
    %c0_i32 = arith.constant 0 : i32
    %c0_i32_0 = arith.constant 0 : i32
    %c0_i32_1 = arith.constant 0 : i32
    return %c0_i32, %c0_i32_0 : i32, i32
  }
  func.func @transform_7(%arg0: i32) -> (i32, i32) {
    %c0_i32 = arith.constant 0 : i32
    %c0_i32_0 = arith.constant 0 : i32
    return %arg0, %c0_i32 : i32, i32
  }
}

</mosaic_0001>

<bundles_post_ra>
// kernel: tpu_custom_call.1
= control target key start
LH: loop header
LB: loop body
LE: loop exit
PB: predicated region body
PF: predicated region fallthrough
CT: control target
= control target key end

     0   :  { %12 = vsyncpa [#allocation3], 0  ;;  %s1995_s0 = inlined_call_operand.hbm [shape: bf16[8,784], index: 0, kind: input, shape index: {}]   ;;  %s1996_s1 = inlined_call_operand.hbm [shape: bf16[784,256], index: 1, kind: input, shape index: {}]   ;;  %s1997_s2 = inlined_call_operand.vmem [shape: f32[1,256], index: 2, kind: input, shape index: {}]   ;;  %s1998_s3 = inlined_call_operand.hbm [shape: bf16[256,256], index: 3, kind: input, shape index: {}]   ;;  %s1999_s4 = inlined_call_operand.vmem [shape: f32[1,256], index: 4, kind: input, shape index: {}]   ;;  %s2000_s5 = inlined_call_operand.hbm [shape: bf16[256,128], index: 5, kind: input, shape index: {}]   ;;  %s2001_s6 = inlined_call_operand.vmem [shape: f32[1,128], index: 6, kind: input, shape index: {}]   ;;  %s2002_s7 = inlined_call_operand.hbm [shape: f32[8,128], index: 7, kind: output, shape index: {}]  }
   0x1   :  { %13 = vsyncpa [#allocation6], 0 }
   0x2   :  { %14 = vsyncpa [#allocation9], 0 }
   0x3   :  { %15 = vsyncpa [#allocation4], 0  ;;  %s1858_s24 = smov [#allocation5]   ;;  %s1740_s28 = scalar_lea.hbm %s1996_s1, 12544 }
   0x4   :  { %s31_s25 = sshll.u32 %s1858_s24, 4  ;;  %p1741_p0 = scmp.ne.s32.totalorder %s1996_s1, %s1740_s28  ;;  %s32_s25 = int_to_ptr.vmem [resolvable:$true] %s31_s25 }
   0x5   :  { %p1744_p1 = scmp.lt.u32.totalorder %s1740_s28, %s1996_s1 }
   0x7   :  { %p1746_p2 = pnand %p1744_p1, %p1741_p0 }
   0x9   :  { %1749 = shalt.err (!%p1746_p2)
}
   0xa   :  { %s1750_s10 = scalar_lea.vmem %s32_s25, 12544  ;;  %p1755_p4 = scmp.lt.s32.totalorder %s32_s25, %s32_s25 }
   0xb   :  { %p1751_p3 = scmp.ne.s32.totalorder %s32_s25, %s1750_s10  ;;  %p1756_p5 = scmp.lt.s32.totalorder %s1750_s10, %s1750_s10 }
   0xd   :  { %p1757_p6 = por %p1756_p5, %p1755_p4 }
   0xf   :  { %p1758_p7 = pnand %p1757_p6, %p1751_p3 }
  0x11   :  { %1761 = shalt.err (!%p1758_p7)
}
  0x12   :  { %s1859_s11 = smov 128   ;;  %s1860_s12 = smov 8  }
  0x13   :  { %37 = dma.hbm_to_vmem [thread:$0]  %s1996_s1, 12544, %s32_s25, [#allocation6], %s1859_s11, %s1859_s11, %s1860_s12  }
  0x14   :  { %s1861_s15 = smov [#allocation2]   ;;  %s1862_s17 = smov [#allocation7]  }
  0x15   :  { %s22_s16 = sshll.u32 %s1861_s15, 4  ;;  %s45_s18 = sshll.u32 %s1862_s17, 4  ;;  %s23_s16 = int_to_ptr.vmem [resolvable:$true] %s22_s16  ;;  %s46_s18 = int_to_ptr.vmem [resolvable:$true] %s45_s18 }
  0x16   :  { %s1762_s21 = scalar_lea.hbm %s1995_s0, 448 }
  0x17   :  { %p1763_p8 = scmp.ne.s32.totalorder %s1995_s0, %s1762_s21  ;;  %p1766_p9 = scmp.lt.u32.totalorder %s1762_s21, %s1995_s0 }
  0x19   :  { %p1768_p10 = pnand %p1766_p9, %p1763_p8 }
  0x1b   :  { %1771 = shalt.err (!%p1768_p10)
}
  0x1c   :  { %s1772_s1 = scalar_lea.vmem %s23_s16, 448  ;;  %p1777_p12 = scmp.lt.s32.totalorder %s23_s16, %s23_s16 }
  0x1d   :  { %p1773_p11 = scmp.ne.s32.totalorder %s23_s16, %s1772_s1  ;;  %p1778_p13 = scmp.lt.s32.totalorder %s1772_s1, %s1772_s1 }
  0x1f   :  { %p1779_p0 = por %p1778_p13, %p1777_p12 }
  0x21   :  { %p1780_p1 = pnand %p1779_p0, %p1773_p11 }
  0x23   :  { %1783 = shalt.err (!%p1780_p1)
}
  0x24   :  { %25 = dma.hbm_to_vmem [thread:$0]  %s1995_s0, 448, %s23_s16, [#allocation3]  }
  0x25   :  { %s1784_s30 = scalar_lea.hbm %s1998_s3, 4096 }
  0x26   :  { %p1785_p2 = scmp.ne.s32.totalorder %s1998_s3, %s1784_s30  ;;  %p1788_p3 = scmp.lt.u32.totalorder %s1784_s30, %s1998_s3 }
  0x28   :  { %p1790_p4 = pnand %p1788_p3, %p1785_p2 }
  0x2a   :  { %1793 = shalt.err (!%p1790_p4)
}
  0x2b   :  { %s1794_s14 = scalar_lea.vmem %s46_s18, 4096  ;;  %p1799_p6 = scmp.lt.s32.totalorder %s46_s18, %s46_s18 }
  0x2c   :  { %p1795_p5 = scmp.ne.s32.totalorder %s46_s18, %s1794_s14  ;;  %p1800_p7 = scmp.lt.s32.totalorder %s1794_s14, %s1794_s14 }
  0x2e   :  { %p1801_p8 = por %p1800_p7, %p1799_p6 }
  0x30   :  { %p1802_p9 = pnand %p1801_p8, %p1795_p5 }
  0x32   :  { %1805 = shalt.err (!%p1802_p9)
}
  0x33   :  { %51 = dma.hbm_to_vmem [thread:$0]  %s1998_s3, 4096, %s46_s18, [#allocation6], %s1859_s11, %s1859_s11, %s1860_s12  }
  0x34   :  { %s1863_s16 = smov [#allocation8]   ;;  %s1806_s21 = scalar_lea.hbm %s2000_s5, 2048 }
  0x35   :  { %s59_s17 = sshll.u32 %s1863_s16, 4  ;;  %p1807_p10 = scmp.ne.s32.totalorder %s2000_s5, %s1806_s21  ;;  %s60_s17 = int_to_ptr.vmem [resolvable:$true] %s59_s17 }
  0x36   :  { %p1810_p11 = scmp.lt.u32.totalorder %s1806_s21, %s2000_s5 }
  0x38   :  { %p1812_p12 = pnand %p1810_p11, %p1807_p10 }
  0x3a   :  { %1815 = shalt.err (!%p1812_p12)
}
  0x3b   :  { %s1816_s1 = scalar_lea.vmem %s60_s17, 2048  ;;  %p1821_p0 = scmp.lt.s32.totalorder %s60_s17, %s60_s17 }
  0x3c   :  { %p1817_p13 = scmp.ne.s32.totalorder %s60_s17, %s1816_s1  ;;  %p1822_p1 = scmp.lt.s32.totalorder %s1816_s1, %s1816_s1 }
  0x3e   :  { %p1823_p2 = por %p1822_p1, %p1821_p0 }
  0x40   :  { %p1824_p3 = pnand %p1823_p2, %p1817_p13 }
  0x42   :  { %1827 = shalt.err (!%p1824_p3)
}
  0x43   :  { %s1864_s3 = smov 64   ;;  %s1865_s11 = smov 4  }
  0x44   :  { %65 = dma.hbm_to_vmem [thread:$0]  %s2000_s5, 2048, %s60_s17, [#allocation9], %s1864_s3, %s1864_s3, %s1865_s11  }
  0x45   :  { %1850 = dma.done.wait [#allocation3], 448  }
  0x46   :  { %1851 = vsyncadd [#allocation3], 4294966848 }
  0x47   :  { %1852 = dma.done.wait [#allocation6], 16640  }
  0x48   :  { %1853 = vsyncadd [#allocation6], 4294950656 }
  0x49   :  { %1854 = dma.done.wait [#allocation9], 2048  }
  0x4a   :  { %1855 = vsyncadd [#allocation9], 4294965248  ;;  %v1522_v0 = vld [vmem:[#allocation5 + $0x104] ss:$8 sps:$4 sm:$0xff]   ;;  %v1524_v1 = vld [vmem:[#allocation5 + $0x100] ss:$8 sps:$4 sm:$0xff]  }
  0x4b   :  { %754 = vmatprep.subr.bf16.mxu0 %v1522_v0  ;;  %v1525_v2 = vld [vmem:[#allocation5 + $0x114] ss:$8 sps:$4 sm:$0xff]   ;;  %v1527_v3 = vld [vmem:[#allocation5 + $0x110] ss:$8 sps:$4 sm:$0xff]   ;;  %v1528_v4 = vld [vmem:[#allocation5 + $0x124] ss:$8 sps:$4 sm:$0xff]  }
  0x4c   :  { %755 = vmatpush1.bf16.msra.mxu0 %v1524_v1  ;;  %v1530_v5 = vld [vmem:[#allocation5 + $0x120] ss:$8 sps:$4 sm:$0xff]   ;;  %v1531_v6 = vld [vmem:[#allocation5 + $0x134] ss:$8 sps:$4 sm:$0xff]   ;;  %v1533_v7 = vld [vmem:[#allocation5 + $0x130] ss:$8 sps:$4 sm:$0xff]  }
  0x4d   :  { %756 = vmatprep.subr.bf16.mxu0 %v1525_v2  ;;  %v1534_v8 = vld [vmem:[#allocation5 + $0x144] ss:$8 sps:$4 sm:$0xff]   ;;  %v1536_v9 = vld [vmem:[#allocation5 + $0x140] ss:$8 sps:$4 sm:$0xff]   ;;  %v1537_v10 = vld [vmem:[#allocation5 + $0x154] ss:$8 sps:$4 sm:$0xff]  }
  0x4e   :  { %v1539_v11 = vld [vmem:[#allocation5 + $0x150] ss:$8 sps:$4 sm:$0xff]   ;;  %v1540_v12 = vld [vmem:[#allocation5 + $0x164] ss:$8 sps:$4 sm:$0xff]   ;;  %v1542_v15 = vld [vmem:[#allocation5 + $0x160] ss:$8 sps:$4 sm:$0xff]  }
  0x4f   :  { %v1962_v13 = vld [vmem:[#allocation2 + $0x8] sm:$0xff]  ;;  %v1543_v16 = vld [vmem:[#allocation5 + $0x174] ss:$8 sps:$4 sm:$0xff]   ;;  %v1583_v19 = vld [vmem:[#allocation5] ss:$8 sps:$4 sm:$0xff]   ;;  %vm709_vm0 = vcmask 130048  }
  0x50   :  { %757 = vmatpush1.bf16.msra.mxu0 %v1527_v3  ;;  %v1326_v14 = vcombine.high %v1962_v13, %v1962_v13  ;;  %v1578_v17 = vld [vmem:[#allocation5 + $0x4] ss:$8 sps:$4 sm:$0xff]   ;;  %v1545_v18 = vld [vmem:[#allocation5 + $0x170] ss:$8 sps:$4 sm:$0xff]   ;;  %v1584_v20 = vld [vmem:[#allocation5 + $0x14] ss:$8 sps:$4 sm:$0xff]   ;;  %v1325_v57 = vcombine.low %v1962_v13, %v1962_v13 }
  0x51   :  { %758 = vmatprep.subr.bf16.mxu0 %v1528_v4  ;;  %713 = vmatprep.subr.bf16.mxu1 %v1578_v17  ;;  %v1546_v21 = vld [vmem:[#allocation5 + $0x184] ss:$8 sps:$4 sm:$0xff]   ;;  %v1589_v22 = vld [vmem:[#allocation5 + $0x10] ss:$8 sps:$4 sm:$0xff]   ;;  %v1548_v24 = vld [vmem:[#allocation5 + $0x180] ss:$8 sps:$4 sm:$0xff]  }
  0x52   :  { %786 = vmatprep.mubr.bf16.mxu0 %v1326_v14  ;;  %714 = vmatpush1.bf16.msra.mxu1 %v1583_v19  ;;  %v1590_v23 = vld [vmem:[#allocation5 + $0x24] ss:$8 sps:$4 sm:$0xff]   ;;  %v1549_v25 = vld [vmem:[#allocation5 + $0x194] ss:$8 sps:$4 sm:$0xff]   ;;  %v1595_v26 = vld [vmem:[#allocation5 + $0x20] ss:$8 sps:$4 sm:$0xff]  }
  0x53   :  { %715 = vmatprep.subr.bf16.mxu1 %v1584_v20  ;;  %v1596_v27 = vld [vmem:[#allocation5 + $0x34] ss:$8 sps:$4 sm:$0xff]   ;;  %v1551_v28 = vld [vmem:[#allocation5 + $0x190] ss:$8 sps:$4 sm:$0xff]   ;;  %v1552_v29 = vld [vmem:[#allocation5 + $0x1a4] ss:$8 sps:$4 sm:$0xff]  }
  0x54   :  { %759 = vmatpush1.bf16.msra.mxu0 %v1530_v5  ;;  %v1601_v30 = vld [vmem:[#allocation5 + $0x30] ss:$8 sps:$4 sm:$0xff]   ;;  %v1602_v31 = vld [vmem:[#allocation5 + $0x44] ss:$8 sps:$4 sm:$0xff]   ;;  %v1554_v32 = vld [vmem:[#allocation5 + $0x1a0] ss:$8 sps:$4 sm:$0xff]  }
  0x55   :  { %760 = vmatprep.subr.bf16.mxu0 %v1531_v6  ;;  %v1555_v33 = vld [vmem:[#allocation5 + $0x1b4] ss:$8 sps:$4 sm:$0xff]   ;;  %v1607_v34 = vld [vmem:[#allocation5 + $0x40] ss:$8 sps:$4 sm:$0xff]   ;;  %v1557_v36 = vld [vmem:[#allocation5 + $0x1b0] ss:$8 sps:$4 sm:$0xff]  }
  0x56   :  { %716 = vmatpush1.bf16.msra.mxu1 %v1589_v22  ;;  %v1608_v35 = vld [vmem:[#allocation5 + $0x54] ss:$8 sps:$4 sm:$0xff]   ;;  %v1558_v37 = vld [vmem:[#allocation5 + $0x1c4] ss:$8 sps:$4 sm:$0xff]   ;;  %v1613_v38 = vld [vmem:[#allocation5 + $0x50] ss:$8 sps:$4 sm:$0xff]  }
  0x57   :  { %717 = vmatprep.subr.bf16.mxu1 %v1590_v23  ;;  %v1614_v39 = vld [vmem:[#allocation5 + $0x64] ss:$8 sps:$4 sm:$0xff]   ;;  %v1560_v40 = vld [vmem:[#allocation5 + $0x1c0] ss:$8 sps:$4 sm:$0xff]   ;;  %v1561_v41 = vld [vmem:[#allocation5 + $0x1d4] ss:$8 sps:$4 sm:$0xff]  }
  0x58   :  { %761 = vmatpush1.bf16.msra.mxu0 %v1533_v7  ;;  %v1619_v42 = vld [vmem:[#allocation5 + $0x60] ss:$8 sps:$4 sm:$0xff]   ;;  %v1620_v43 = vld [vmem:[#allocation5 + $0x74] ss:$8 sps:$4 sm:$0xff]   ;;  %v1563_v44 = vld [vmem:[#allocation5 + $0x1d0] ss:$8 sps:$4 sm:$0xff]  }
  0x59   :  { %762 = vmatprep.subr.bf16.mxu0 %v1534_v8  ;;  %v1564_v45 = vld [vmem:[#allocation5 + $0x1e4] ss:$8 sps:$4 sm:$0xff]   ;;  %v1625_v46 = vld [vmem:[#allocation5 + $0x70] ss:$8 sps:$4 sm:$0xff]   ;;  %v1566_v48 = vld [vmem:[#allocation5 + $0x1e0] ss:$8 sps:$4 sm:$0xff]  }
  0x5a   :  { %718 = vmatpush1.bf16.msra.mxu1 %v1595_v26  ;;  %v1626_v47 = vld [vmem:[#allocation5 + $0x84] ss:$8 sps:$4 sm:$0xff]   ;;  %v1567_v49 = vld [vmem:[#allocation5 + $0x1f4] ss:$8 sps:$4 sm:$0xff]   ;;  %v1631_v50 = vld [vmem:[#allocation5 + $0x80] ss:$8 sps:$4 sm:$0xff]  }
  0x5b   :  { %719 = vmatprep.subr.bf16.mxu1 %v1596_v27  ;;  %v1632_v51 = vld [vmem:[#allocation5 + $0x94] ss:$8 sps:$4 sm:$0xff]   ;;  %v1569_v52 = vld [vmem:[#allocation5 + $0x1f0] ss:$8 sps:$4 sm:$0xff]   ;;  %v1574_v53 = vld [vmem:[#allocation5 + $0x204] ss:$8 sps:$4 sm:$0xff]  }
  0x5c   :  { %763 = vmatpush1.bf16.msra.mxu0 %v1536_v9  ;;  %v1637_v54 = vld [vmem:[#allocation5 + $0x90] ss:$8 sps:$4 sm:$0xff]   ;;  %v1638_v55 = vld [vmem:[#allocation5 + $0xa4] ss:$8 sps:$4 sm:$0xff]   ;;  %v1572_v58 = vld [vmem:[#allocation5 + $0x200] ss:$8 sps:$4 sm:$0xff]  }
  0x5d   :  { %764 = vmatprep.subr.bf16.mxu0 %v1537_v10  ;;  %v1966_v56 = vld [vmem:[#allocation2 + $0x10] sm:$0xff]  ;;  %v1643_v61 = vld [vmem:[#allocation5 + $0xa0] ss:$8 sps:$4 sm:$0xff]   ;;  %v1582_v1 = vld [vmem:[#allocation5 + $0x224] ss:$8 sps:$4 sm:$0xff]  }
  0x5e   :  { %720 = vmatpush1.bf16.msra.mxu1 %v1601_v30  ;;  %v1328_v59 = vcombine.high %v1966_v56, %v1966_v56  ;;  %v1577_v60 = vld [vmem:[#allocation5 + $0x214] ss:$8 sps:$4 sm:$0xff]   ;;  %v1575_v63 = vld [vmem:[#allocation5 + $0x210] ss:$8 sps:$4 sm:$0xff]   ;;  %v81_v0 = vld [vmem:[#allocation2] sm:$0xff] }
  0x5f   :  { %721 = vmatprep.subr.bf16.mxu1 %v1602_v31  ;;  %v1644_v62 = vld [vmem:[#allocation5 + $0xb4] ss:$8 sps:$4 sm:$0xff]   ;;  %v1324_v2 = vcombine.high %v81_v0, %v81_v0  ;;  %v1649_v3 = vld [vmem:[#allocation5 + $0xb0] ss:$8 sps:$4 sm:$0xff]   ;;  %v1650_v4 = vld [vmem:[#allocation5 + $0xc4] ss:$8 sps:$4 sm:$0xff]  }
  0x60   :  { %765 = vmatpush1.bf16.msra.mxu0 %v1539_v11  ;;  %v1580_v5 = vld [vmem:[#allocation5 + $0x220] ss:$8 sps:$4 sm:$0xff]   ;;  %v1588_v6 = vld [vmem:[#allocation5 + $0x234] ss:$8 sps:$4 sm:$0xff]   ;;  %v1586_v9 = vld [vmem:[#allocation5 + $0x230] ss:$8 sps:$4 sm:$0xff]  }
  0x61   :  { %766 = vmatprep.subr.bf16.mxu0 %v1540_v12  ;;  %745 = vmatprep.mubr.bf16.mxu1 %v1324_v2  ;;  %v1655_v7 = vld [vmem:[#allocation5 + $0xc0] ss:$8 sps:$4 sm:$0xff]   ;;  %v1656_v8 = vld [vmem:[#allocation5 + $0xd4] ss:$8 sps:$4 sm:$0xff]   ;;  %v1594_v10 = vld [vmem:[#allocation5 + $0x244] ss:$8 sps:$4 sm:$0xff]  }
  0x62   :  { %722 = vmatpush1.bf16.msra.mxu1 %v1607_v34  ;;  %v1661_v11 = vld [vmem:[#allocation5 + $0xd0] ss:$8 sps:$4 sm:$0xff]   ;;  %v1664_v12 = vld [vmem:[#allocation5 + $0xe4] ss:$8 sps:$4 sm:$0xff]   ;;  %v1592_v13 = vld [vmem:[#allocation5 + $0x240] ss:$8 sps:$4 sm:$0xff]  }
  0x63   :  { %723 = vmatprep.subr.bf16.mxu1 %v1608_v35  ;;  %v1600_v14 = vld [vmem:[#allocation5 + $0x254] ss:$8 sps:$4 sm:$0xff]   ;;  %v1598_v17 = vld [vmem:[#allocation5 + $0x250] ss:$8 sps:$4 sm:$0xff]   ;;  %v1618_v27 = vld [vmem:[#allocation5 + $0x284] ss:$8 sps:$4 sm:$0xff]  }
  0x64   :  { %767 = vmatpush1.bf16.msra.mxu0 %v1542_v15  ;;  %v1669_v15 = vld [vmem:[#allocation5 + $0xe0] ss:$8 sps:$4 sm:$0xff]   ;;  %v1672_v19 = vld [vmem:[#allocation5 + $0xf0] ss:$8 sps:$4 sm:$0xff]   ;;  %v1678_v20 = vld [vmem:[#allocation7 + $0x4] ss:$8 sps:$4 sm:$0xff]  }
  0x65   :  { %768 = vmatprep.subr.bf16.mxu0 %v1543_v16  ;;  %v1670_v16 = vld [vmem:[#allocation5 + $0xf4] ss:$8 sps:$4 sm:$0xff]   ;;  %v1676_v23 = vld [vmem:[#allocation7] ss:$8 sps:$4 sm:$0xff]   ;;  %v1616_v30 = vld [vmem:[#allocation5 + $0x280] ss:$8 sps:$4 sm:$0xff]  }
  0x66   :  { %724 = vmatpush1.bf16.msra.mxu1 %v1613_v38  ;;  %v1612_v22 = vld [vmem:[#allocation5 + $0x274] ss:$8 sps:$4 sm:$0xff]   ;;  %v1610_v26 = vld [vmem:[#allocation5 + $0x270] ss:$8 sps:$4 sm:$0xff]   ;;  %v1630_v35 = vld [vmem:[#allocation5 + $0x2a4] ss:$8 sps:$4 sm:$0xff]  }
  0x67   :  { %725 = vmatprep.subr.bf16.mxu1 %v1614_v39  ;;  %v1624_v31 = vld [vmem:[#allocation5 + $0x294] ss:$8 sps:$4 sm:$0xff]   ;;  %v1622_v34 = vld [vmem:[#allocation5 + $0x290] ss:$8 sps:$4 sm:$0xff]   ;;  %v1628_v38 = vld [vmem:[#allocation5 + $0x2a0] ss:$8 sps:$4 sm:$0xff]  }
  0x68   :  { %769 = vmatpush1.bf16.msra.mxu0 %v1545_v18  ;;  %v1606_v18 = vld [vmem:[#allocation5 + $0x264] ss:$8 sps:$4 sm:$0xff]   ;;  %v1636_v39 = vld [vmem:[#allocation5 + $0x2b4] ss:$8 sps:$4 sm:$0xff]  }
  0x69   :  { %770 = vmatprep.subr.bf16.mxu0 %v1546_v21  ;;  %v1604_v21 = vld [vmem:[#allocation5 + $0x260] ss:$8 sps:$4 sm:$0xff]   ;;  %v1711_v2 = vld [vmem:[#allocation7 + $0xb4] ss:$8 sps:$4 sm:$0xff]  }
  0x6a   :  { %726 = vmatpush1.bf16.msra.mxu1 %v1619_v42  ;;  %v1634_v42 = vld [vmem:[#allocation5 + $0x2b0] ss:$8 sps:$4 sm:$0xff]  }
  0x6b   :  { %727 = vmatprep.subr.bf16.mxu1 %v1620_v43  ;;  %v1642_v43 = vld [vmem:[#allocation5 + $0x2c4] ss:$8 sps:$4 sm:$0xff]  }
  0x6c   :  { %771 = vmatpush1.bf16.msra.mxu0 %v1548_v24  ;;  %v1323_v24 = vcombine.low %v81_v0, %v81_v0  ;;  %v1666_v0 = vld [vmem:[#allocation5 + $0x300] ss:$8 sps:$4 sm:$0xff]  }
  0x6d   :  { %772 = vmatprep.subr.bf16.mxu0 %v1549_v25  ;;  %v1681_v25 = vld [vmem:[#allocation7 + $0x14] ss:$8 sps:$4 sm:$0xff]  }
  0x6e   :  { %728 = vmatpush1.bf16.msra.mxu1 %v1625_v46  ;;  %v1640_v46 = vld [vmem:[#allocation5 + $0x2c0] ss:$8 sps:$4 sm:$0xff]  }
  0x6f   :  { %729 = vmatprep.subr.bf16.mxu1 %v1626_v47  ;;  %v1648_v47 = vld [vmem:[#allocation5 + $0x2d4] ss:$8 sps:$4 sm:$0xff]  }
  0x70   :  { %773 = vmatpush1.bf16.msra.mxu0 %v1551_v28  ;;  %v1679_v28 = vld [vmem:[#allocation7 + $0x10] ss:$8 sps:$4 sm:$0xff]  }
  0x71   :  { %774 = vmatprep.subr.bf16.mxu0 %v1552_v29  ;;  %v1684_v29 = vld [vmem:[#allocation7 + $0x24] ss:$8 sps:$4 sm:$0xff]  }
  0x72   :  { %730 = vmatpush1.bf16.msra.mxu1 %v1631_v50  ;;  %v1646_v50 = vld [vmem:[#allocation5 + $0x2d0] ss:$8 sps:$4 sm:$0xff]  }
  0x73   :  { %731 = vmatprep.subr.bf16.mxu1 %v1632_v51  ;;  %v1654_v51 = vld [vmem:[#allocation5 + $0x2e4] ss:$8 sps:$4 sm:$0xff]  }
  0x74   :  { %775 = vmatpush1.bf16.msra.mxu0 %v1554_v32  ;;  %v1682_v32 = vld [vmem:[#allocation7 + $0x20] ss:$8 sps:$4 sm:$0xff]  }
  0x75   :  { %776 = vmatprep.subr.bf16.mxu0 %v1555_v33  ;;  %v1687_v33 = vld [vmem:[#allocation7 + $0x34] ss:$8 sps:$4 sm:$0xff]  }
  0x76   :  { %732 = vmatpush1.bf16.msra.mxu1 %v1637_v54  ;;  %v1652_v54 = vld [vmem:[#allocation5 + $0x2e0] ss:$8 sps:$4 sm:$0xff]  }
  0x77   :  { %733 = vmatprep.subr.bf16.mxu1 %v1638_v55  ;;  %v1660_v55 = vld [vmem:[#allocation5 + $0x2f4] ss:$8 sps:$4 sm:$0xff]  }
  0x78   :  { %777 = vmatpush1.bf16.msra.mxu0 %v1557_v36  ;;  %v1685_v36 = vld [vmem:[#allocation7 + $0x30] ss:$8 sps:$4 sm:$0xff]  }
  0x79   :  { %778 = vmatprep.subr.bf16.mxu0 %v1558_v37  ;;  %v1690_v37 = vld [vmem:[#allocation7 + $0x44] ss:$8 sps:$4 sm:$0xff]  }
  0x7a   :  { %734 = vmatpush1.bf16.msra.mxu1 %v1643_v61  ;;  %v1703_v61 = vld [vmem:[#allocation7 + $0x90] ss:$8 sps:$4 sm:$0xff]  }
  0x7b   :  { %735 = vmatprep.subr.bf16.mxu1 %v1644_v62  ;;  %v1708_v62 = vld [vmem:[#allocation7 + $0xa4] ss:$8 sps:$4 sm:$0xff]  }
  0x7c   :  { %779 = vmatpush1.bf16.msra.mxu0 %v1560_v40  ;;  %v1688_v40 = vld [vmem:[#allocation7 + $0x40] ss:$8 sps:$4 sm:$0xff]  }
  0x7d   :  { %780 = vmatprep.subr.bf16.mxu0 %v1561_v41  ;;  %v1693_v41 = vld [vmem:[#allocation7 + $0x54] ss:$8 sps:$4 sm:$0xff]  }
  0x7e   :  { %736 = vmatpush1.bf16.msra.mxu1 %v1649_v3  ;;  %v1866_v3 = vmov 0  }
  0x7f   :  { %737 = vmatprep.subr.bf16.mxu1 %v1650_v4  ;;  %v1709_v4 = vld [vmem:[#allocation7 + $0xb0] ss:$8 sps:$4 sm:$0xff]  }
  0x80   :  { %781 = vmatpush1.bf16.msra.mxu0 %v1563_v44  ;;  %v1691_v44 = vld [vmem:[#allocation7 + $0x50] ss:$8 sps:$4 sm:$0xff]  }
  0x81   :  { %782 = vmatprep.subr.bf16.mxu0 %v1564_v45  ;;  %v1696_v45 = vld [vmem:[#allocation7 + $0x64] ss:$8 sps:$4 sm:$0xff]  }
  0x82   :  { %738 = vmatpush1.bf16.msra.mxu1 %v1655_v7  ;;  %v1675_v7 = vld [vmem:[#allocation2 + $0x18] ss:$0 sps:$4 sm:$0xff]  }
  0x83   :  { %739 = vmatprep.subr.bf16.mxu1 %v1656_v8  ;;  %v1717_v8 = vld [vmem:[#allocation7 + $0xd4] ss:$8 sps:$4 sm:$0xff]  }
  0x84   :  { %783 = vmatpush1.bf16.msra.mxu0 %v1566_v48  ;;  %v1694_v48 = vld [vmem:[#allocation7 + $0x60] ss:$8 sps:$4 sm:$0xff]  }
  0x85   :  { %784 = vmatprep.subr.bf16.mxu0 %v1567_v49  ;;  %v1699_v49 = vld [vmem:[#allocation7 + $0x74] ss:$8 sps:$4 sm:$0xff]  }
  0x86   :  { %740 = vmatpush1.bf16.msra.mxu1 %v1661_v11  ;;  %v1723_v11 = vld [vmem:[#allocation7 + $0xf4] ss:$8 sps:$4 sm:$0xff]  }
  0x87   :  { %741 = vmatprep.subr.bf16.mxu1 %v1664_v12  ;;  %v1721_v12 = vld [vmem:[#allocation7 + $0xf0] ss:$8 sps:$4 sm:$0xff]  }
  0x88   :  { %785 = vmatpush1.bf16.msra.mxu0 %v1569_v52  ;;  %v1697_v52 = vld [vmem:[#allocation7 + $0x70] ss:$8 sps:$4 sm:$0xff]  }
  0x89   :  { %795 = vmatprep.subr.bf16.mxu0 %v1574_v53  ;;  %v1702_v53 = vld [vmem:[#allocation7 + $0x84] ss:$8 sps:$4 sm:$0xff]  }
  0x8a   :  { %742 = vmatpush1.bf16.msra.mxu1 %v1669_v15 }
  0x8b   :  { %787 = vmatmul.mubr.bf16.vlgmr.msra.gmra.mrb[0].mxu0 %v1325_v57  ;;  %743 = vmatprep.subr.bf16.mxu1 %v1670_v16  ;;  %v1700_v57 = vld [vmem:[#allocation7 + $0x80] ss:$8 sps:$4 sm:$0xff]  }
  0x8c   :  { %796 = vmatpush1.bf16.msra.mxu0 %v1572_v58  ;;  %827 = vmatprep.mubr.bf16.mxu0 %v1328_v59  ;;  %v1705_v58 = vld [vmem:[#allocation7 + $0x94] ss:$8 sps:$4 sm:$0xff]   ;;  %v1658_v59 = vld [vmem:[#allocation5 + $0x2f0] ss:$8 sps:$4 sm:$0xff]  }
  0x8d   :  { %797 = vmatprep.subr.bf16.mxu0 %v1577_v60  ;;  %v1668_v60 = vld [vmem:[#allocation5 + $0x304] ss:$8 sps:$4 sm:$0xff]  }
  0x8e   :  { %744 = vmatpush1.bf16.msra.mxu1 %v1672_v19 }
  0x8f   :  { %1085 = vmatprep.subr.bf16.mxu1 %v1678_v20 }
  0x90   :  { %798 = vmatpush1.bf16.msra.mxu0 %v1575_v63  ;;  %v1327_v63 = vcombine.low %v1966_v56, %v1966_v56  ;;  %v1715_v56 = vld [vmem:[#allocation7 + $0xd0] ss:$8 sps:$4 sm:$0xff]  }
  0x91   :  { %799 = vmatprep.subr.bf16.mxu0 %v1582_v1  ;;  %746 = vmatmul.mubr.bf16.vlgmr.msra.gmra.mrb[0].mxu1 %v1323_v24  ;;  %v1706_v1 = vld [vmem:[#allocation7 + $0xa0] ss:$8 sps:$4 sm:$0xff]  }
  0x92   :  { %1086 = vmatpush1.bf16.msra.mxu1 %v1676_v23 }
  0x93   :  { %1087 = vmatprep.subr.bf16.mxu1 %v1681_v25 }
  0x94   :  { %800 = vmatpush1.bf16.msra.mxu0 %v1580_v5  ;;  %v1714_v5 = vld [vmem:[#allocation7 + $0xc4] ss:$8 sps:$4 sm:$0xff]  }
  0x95   :  { %801 = vmatprep.subr.bf16.mxu0 %v1588_v6  ;;  %v1712_v6 = vld [vmem:[#allocation7 + $0xc0] ss:$8 sps:$4 sm:$0xff]  }
  0x96   :  { %1088 = vmatpush1.bf16.msra.mxu1 %v1679_v28 }
  0x97   :  { %1089 = vmatprep.subr.bf16.mxu1 %v1684_v29 }
  0x98   :  { %802 = vmatpush1.bf16.msra.mxu0 %v1586_v9  ;;  %v1720_v9 = vld [vmem:[#allocation7 + $0xe4] ss:$8 sps:$4 sm:$0xff]  }
  0x99   :  { %803 = vmatprep.subr.bf16.mxu0 %v1594_v10  ;;  %v1718_v10 = vld [vmem:[#allocation7 + $0xe0] ss:$8 sps:$4 sm:$0xff]  }
  0x9a   :  { %1090 = vmatpush1.bf16.msra.mxu1 %v1682_v32 }
  0x9b   :  { %1091 = vmatprep.subr.bf16.mxu1 %v1687_v33 }
  0x9c   :  { %804 = vmatpush1.bf16.msra.mxu0 %v1592_v13  ;;  %v1724_v13 = vld [vmem:[#allocation8 + $0x40] sm:$0xff]  }
  0x9d   :  { %805 = vmatprep.subr.bf16.mxu0 %v1600_v14 }
  0x9e   :  { %1092 = vmatpush1.bf16.msra.mxu1 %v1685_v36  ;;  %v1725_v36 = vld [vmem:[#allocation8] sm:$0xff]  }
  0x9f   :  { %1093 = vmatprep.subr.bf16.mxu1 %v1690_v37 }
  0xa0   :  { %806 = vmatpush1.bf16.msra.mxu0 %v1598_v17 }
  0xa1   :  { %807 = vmatprep.subr.bf16.mxu0 %v1606_v18  ;;  %v185_v18 = vlaneseq }
  0xa2   :  { %1094 = vmatpush1.bf16.msra.mxu1 %v1688_v40  ;;  %v1728_v40 = vld [vmem:[#allocation8 + $0x50] sm:$0xff]  }
  0xa3   :  { %1095 = vmatprep.subr.bf16.mxu1 %v1693_v41  ;;  %v186_v19 = vshrl.u32 %v185_v18, 7  ;;  %v1729_v41 = vld [vmem:[#allocation8 + $0x10] sm:$0xff]  }
  0xa4   :  { %808 = vmatpush1.bf16.msra.mxu0 %v1604_v21  ;;  %v183_v21 = vld [vmem:[%s1997_s2] sm:$0x3] }
  0xa5   :  { %809 = vmatprep.subr.bf16.mxu0 %v1612_v22  ;;  %v187_v20 = vsub.s32 0, %v186_v19  ;;  %v191_v22 = vsub.s32 1, %v186_v19 }
  0xa6   :  { %1096 = vmatpush1.bf16.msra.mxu1 %v1691_v44  ;;  %v1732_v44 = vld [vmem:[#allocation8 + $0x60] sm:$0xff]  }
  0xa7   :  { %1097 = vmatprep.subr.bf16.mxu1 %v1696_v45  ;;  %v188_v23 = vrot.slane %v183_v21, %v187_v20  ;;  %v192_v24 = vrot.slane %v183_v21, %v191_v22  ;;  %v1733_v45 = vld [vmem:[#allocation8 + $0x20] sm:$0xff]  }
  0xa8   :  { %810 = vmatpush1.bf16.msra.mxu0 %v1610_v26 }
  0xa9   :  { %811 = vmatprep.subr.bf16.mxu0 %v1618_v27 }
  0xaa   :  { %1098 = vmatpush1.bf16.msra.mxu1 %v1694_v48  ;;  %v1736_v48 = vld [vmem:[#allocation8 + $0x70] sm:$0xff]  }
  0xab   :  { %1099 = vmatprep.subr.bf16.mxu1 %v1699_v49  ;;  %v1737_v49 = vld [vmem:[#allocation8 + $0x30] sm:$0xff]  }
  0xac   :  { %812 = vmatpush1.bf16.msra.mxu0 %v1616_v30 }
  0xad   :  { %813 = vmatprep.subr.bf16.mxu0 %v1624_v31 }
  0xae   :  { %1100 = vmatpush1.bf16.msra.mxu1 %v1697_v52  ;;  %v913_v52 = vld [vmem:[%s1999_s4] sm:$0x3]  ;;  %s1867_s4 = smov [#allocation10]  }
  0xaf   :  { %1101 = vmatprep.subr.bf16.mxu1 %v1702_v53  ;;  %v918_v53 = vrot.slane %v913_v52, %v187_v20  ;;  %s1312_s30 = sshll.u32 %s1867_s4, 4  ;;  %s1313_s30 = int_to_ptr.vmem [resolvable:$true] %s1312_s30 }
  0xb0   :  { %814 = vmatpush1.bf16.msra.mxu0 %v1622_v34  ;;  %s1828_s8 = scalar_lea.vmem %s1313_s30, 128  ;;  %p1833_p5 = scmp.lt.s32.totalorder %s1313_s30, %s1313_s30 }
  0xb1   :  { %815 = vmatprep.subr.bf16.mxu0 %v1630_v35  ;;  %p1829_p4 = scmp.ne.s32.totalorder %s1313_s30, %s1828_s8  ;;  %p1834_p6 = scmp.lt.s32.totalorder %s1828_s8, %s1828_s8 }
  0xb2   :  { %1102 = vmatpush1.bf16.msra.mxu1 %v1700_v57 }
  0xb3   :  { %1103 = vmatprep.subr.bf16.mxu1 %v1705_v58  ;;  %p1835_p7 = por %p1834_p6, %p1833_p5 }
  0xb4   :  { %816 = vmatpush1.bf16.msra.mxu0 %v1628_v38  ;;  %v1726_v38 = vld [vmem:[#allocation8 + $0x48] sm:$0xff]  }
  0xb5   :  { %817 = vmatprep.subr.bf16.mxu0 %v1636_v39  ;;  %v1727_v39 = vld [vmem:[#allocation8 + $0x8] sm:$0xff]   ;;  %p1836_p8 = pnand %p1835_p7, %p1829_p4 }
  0xb6   :  { %1104 = vmatpush1.bf16.msra.mxu1 %v1703_v61 }
  0xb7   :  { %1105 = vmatprep.subr.bf16.mxu1 %v1708_v62 }
  0xb8   :  { %818 = vmatpush1.bf16.msra.mxu0 %v1634_v42  ;;  %v1730_v42 = vld [vmem:[#allocation8 + $0x58] sm:$0xff]  }
  0xb9   :  { %819 = vmatprep.subr.bf16.mxu0 %v1642_v43  ;;  %v1731_v43 = vld [vmem:[#allocation8 + $0x18] sm:$0xff]  }
  0xba   :  { %1106 = vmatpush1.bf16.msra.mxu1 %v1706_v1 }
  0xbb   :  { %1107 = vmatprep.subr.bf16.mxu1 %v1711_v2 }
  0xbc   :  { %820 = vmatpush1.bf16.msra.mxu0 %v1640_v46  ;;  %v1734_v46 = vld [vmem:[#allocation8 + $0x68] sm:$0xff]  }
  0xbd   :  { %821 = vmatprep.subr.bf16.mxu0 %v1648_v47  ;;  %v1735_v47 = vld [vmem:[#allocation8 + $0x28] sm:$0xff]  }
  0xbe   :  { %1108 = vmatpush1.bf16.msra.mxu1 %v1709_v4 }
  0xbf   :  { %1109 = vmatprep.subr.bf16.mxu1 %v1714_v5 }
  0xc0   :  { %822 = vmatpush1.bf16.msra.mxu0 %v1646_v50  ;;  %v1738_v50 = vld [vmem:[#allocation8 + $0x78] sm:$0xff]  }
  0xc1   :  { %823 = vmatprep.subr.bf16.mxu0 %v1654_v51  ;;  %v1739_v51 = vld [vmem:[#allocation8 + $0x38] sm:$0xff]  }
  0xc2   :  { %1110 = vmatpush1.bf16.msra.mxu1 %v1712_v6 }
  0xc3   :  { %1111 = vmatprep.subr.bf16.mxu1 %v1717_v8 }
  0xc4   :  { %824 = vmatpush1.bf16.msra.mxu0 %v1652_v54  ;;  %v922_v54 = vrot.slane %v913_v52, %v191_v22 }
  0xc5   :  { %825 = vmatprep.subr.bf16.mxu0 %v1660_v55 }
  0xc6   :  { %1112 = vmatpush1.bf16.msra.mxu1 %v1715_v56 }
  0xc7   :  { %1113 = vmatprep.subr.bf16.mxu1 %v1720_v9 }
  0xc8   :  { %826 = vmatpush1.bf16.msra.mxu0 %v1658_v59 }
  0xc9   :  { %836 = vmatprep.subr.bf16.mxu0 %v1668_v60 }
  0xca   :  { %1114 = vmatpush1.bf16.msra.mxu1 %v1718_v10 }
  0xcb   :  { %828 = vmatmul.mubr.bf16.vlgmr.msra.gmra.mrb[0].mxu0 %v1327_v63  ;;  %1115 = vmatprep.subr.bf16.mxu1 %v1723_v11 }
  0xcc   :  { %837 = vmatpush1.bf16.msra.mxu0 %v1666_v0  ;;  %868 = vmatprep.mubr.bf16.mxu0 %v1866_v3  ;;  %v1461_v3 = vld [vmem:[%s2001_s6] ss:$0 sm:$0xff] }
  0xce   :  { %1116 = vmatpush1.bf16.msra.mxu1 %v1721_v12 }
  0xcf   :  { %1478 = vmatprep.subr.bf16.mxu1 %v1724_v13 }
  0xd7   :  { %1428 = vmatmul.mubr.msk.bf16.vlgmr.msra.gmra.mrb[0].mxu0 %vm709_vm0, %v1675_v7 }
 0x164   :  { %v747_v14 = vpop.f32.mrb[0].mxu1 }
 0x165   :  { %v749_v15 = vpop.f32.mrb[1].mxu1  ;;  %v748_v25 = vadd.f32 %v747_v14, %v188_v23 }
 0x166   :  { %v751_v16 = vpop.f32.mrb[2].mxu1  ;;  %v750_v26 = vadd.f32 %v749_v15, %v192_v24 }
 0x167   :  { %v752_v17 = vpop.f32.mrb[3].mxu1 }
 0x1aa   :  { %v870_v27 = vpop.f32.mrb[0].mxu0 }
 0x1ab   :  { %v1501_v28 = vadd.f32 %v870_v27, %v748_v25  ;;  %v872_v29 = vpop.f32.mrb[1].mxu0 }
 0x1ac   :  { %v1503_v30 = vadd.f32 %v872_v29, %v750_v26  ;;  %v874_v31 = vpop.f32.mrb[2].mxu0 }
 0x1ad   :  { %v877_v32 = vmax.f32 %v1501_v28, 0.0  ;;  %v875_v33 = vpop.f32.mrb[3].mxu0 }
 0x1ae   :  { %v878_v34 = vmax.f32 %v1503_v30, 0.0 }
 0x1af   :  { %v879_v37 = vpack.c.bf16 %v877_v32, %v877_v32 }
 0x1b0   :  { %v880_v35 = vpack.c.bf16 %v878_v34, %v878_v34 }
 0x1b2   :  { %1117 = vmatprep.mubr.bf16.mxu1 %v880_v35 }
 0x1b3   :  { %1118 = vmatmul.mubr.bf16.vlgmr.msra.gmra.mrb[4].mxu1 %v879_v37 }
 0x1b4   :  { %1479 = vmatpush3.bf16.msra.mxu1 %v1725_v36 }
 0x1b5   :  { %1480 = vmatprep.subr.bf16.mxu1 %v1726_v38 }
 0x1b8   :  { %1481 = vmatpush3.bf16.msra.mxu1 %v1727_v39 }
 0x1b9   :  { %1482 = vmatprep.subr.bf16.mxu1 %v1728_v40 }
 0x1bc   :  { %1483 = vmatpush3.bf16.msra.mxu1 %v1729_v41 }
 0x1bd   :  { %1484 = vmatprep.subr.bf16.mxu1 %v1730_v42 }
 0x1c0   :  { %1485 = vmatpush3.bf16.msra.mxu1 %v1731_v43 }
 0x1c1   :  { %1486 = vmatprep.subr.bf16.mxu1 %v1732_v44 }
 0x1c4   :  { %1487 = vmatpush3.bf16.msra.mxu1 %v1733_v45 }
 0x1c5   :  { %1488 = vmatprep.subr.bf16.mxu1 %v1734_v46 }
 0x1c8   :  { %1489 = vmatpush3.bf16.msra.mxu1 %v1735_v47 }
 0x1c9   :  { %1490 = vmatprep.subr.bf16.mxu1 %v1736_v48 }
 0x1cc   :  { %1491 = vmatpush3.bf16.msra.mxu1 %v1737_v49 }
 0x1cd   :  { %1492 = vmatprep.subr.bf16.mxu1 %v1738_v50 }
 0x1d0   :  { %1493 = vmatpush3.bf16.msra.mxu1 %v1739_v51 }
 0x286   :  { %v1119_v55 = vpop.f32.mrb[4].mxu1 }
 0x287   :  { %v1120_v57 = vadd.f32 %v1119_v55, %v918_v53  ;;  %v1121_v58 = vpop.f32.mrb[5].mxu1 }
 0x288   :  { %v1122_v59 = vadd.f32 %v1121_v58, %v922_v54  ;;  %v1123_v60 = vpop.f32.mrb[6].mxu1 }
 0x289   :  { %v1126_v61 = vmax.f32 %v1120_v57, 0.0  ;;  %v1124_v62 = vpop.f32.mrb[7].mxu1 }
 0x28a   :  { %v1127_v63 = vmax.f32 %v1122_v59, 0.0 }
 0x28b   :  { %v1128_v1 = vpack.c.bf16 %v1126_v61, %v1126_v61 }
 0x28c   :  { %v1129_v0 = vpack.c.bf16 %v1127_v63, %v1127_v63 }
 0x28e   :  { %1297 = vmatprep.mubr.bf16.mxu1 %v1129_v0 }
 0x28f   :  { %1298 = vmatmul.mubr.bf16.vlgmr.msra.gmra.mrb[8].mxu1 %v1128_v1 }
 0x362   :  { %v1494_v2 = vpop.f32.mrb[8].mxu1 }
 0x363   :  { %v1495_v4 = vpop.f32.mrb[9].mxu1 }
 0x364   :  { %v1496_v5 = vadd.f32 %v1495_v4, %v1494_v2  ;;  %v1497_v6 = vpop.f32.mrb[10].mxu1 }
 0x365   :  { %v1498_v7 = vpop.f32.mrb[11].mxu1 }
 0x366   :  { %v1300_v56 = vadd.f32 %v1496_v5, %v1461_v3 }
 0x368   :  { %1305 = vst [vmem:[#allocation10] sm:$0xff] %v1300_v56 }
 0x369   :  { %1839 = shalt.err (!%p1836_p8)
}
 0x36a   :  { %s1840_s6 = scalar_lea.hbm %s2002_s7, 128 }
 0x36b   :  { %p1841_p9 = scmp.ne.s32.totalorder %s2002_s7, %s1840_s6  ;;  %p1844_p10 = scmp.lt.u32.totalorder %s1840_s6, %s2002_s7 }
 0x36d   :  { %p1846_p11 = pnand %p1844_p10, %p1841_p9 }
 0x36f   :  { %1849 = shalt.err (!%p1846_p11)
}
 0x370   :  { %1315 = dma.vmem_to_hbm [thread:$0]  %s1313_s30, 128, %s2002_s7, [#allocation4]  }
 0x371   :  { %1856 = dma.done.wait [#allocation4], 128  }
 0x372   :  { %1857 = vsyncadd [#allocation4], 4294967168 }
 0x373   :  { %1319 = vsyncpa [#allocation3], 1 }
 0x374   :  { %1320 = vsyncpa [#allocation6], 1 }
 0x375   :  { %1321 = vsyncpa [#allocation9], 1 }
 0x376   :  { %1322 = vsyncpa [#allocation4], 1 }

</bundles_post_ra>
